<compile_context>
chip_gen: v6e
topology: v6e:2x2x1
jax: 0.10.0
libtpu: 0.0.40
codegen_flags: <defaults>
</compile_context>

<pallas_src>
import functools

import jax
import jax.numpy as jnp
from jax import lax
from jax.experimental import pallas as pl
from jax.experimental.pallas import tpu as pltpu


def _im2col_3d_bf16(x, k=4, s=2, p=1):
    """x: (N, C, D, H, W) -> bf16 patches (N, K, P).
    K = C*k^3 with C major and (kd, kh, kw) minor — matches PyTorch
    weight.reshape(C_out, -1).  P = Do*Ho*Wo, row-major."""
    N, C, D, H, W = x.shape
    Do = (D + 2 * p - k) // s + 1
    Ho = (H + 2 * p - k) // s + 1
    Wo = (W + 2 * p - k) // s + 1
    P = Do * Ho * Wo
    xb = x.astype(jnp.bfloat16)          # cast BEFORE building the 8x-sized array
    xp = jnp.pad(xb, ((0, 0), (0, 0), (p, p), (p, p), (p, p)))
    cols = []
    for kd in range(k):
        for kh in range(k):
            for kw in range(k):
                sl = xp[:, :,
                        kd:kd + s * Do:s,
                        kh:kh + s * Ho:s,
                        kw:kw + s * Wo:s]            # (N, C, Do, Ho, Wo)
                cols.append(sl.reshape(N, C, P))
    # (k^3, N, C, P) -> (N, C, k^3, P) -> (N, C*k^3, P)
    patches = jnp.stack(cols, axis=0).transpose(1, 2, 0, 3).reshape(N, C * k ** 3, P)
    return patches, (Do, Ho, Wo)


def _conv_stats_kernel(x_ref, w_ref, y_ref, ssum_ref, ssq_ref, acc_ref, *, w_resident):
    # x_ref: (TK, TP) bf16
    # w_ref: (n_k, Cp, TK) bf16 (resident) or (Cp, TK) bf16 (streamed per K step)
    # y_ref: (Cp, TP) bf16   -- conv tile, written only on the last K step
    # ssum_ref / ssq_ref: (Cp, 1) f32 -- resident across all P and K steps
    # acc_ref: (Cp, TP) f32 VMEM scratch -- K accumulator
    p = pl.program_id(1)
    k = pl.program_id(2)
    nk = pl.num_programs(2)
    first_k = k == 0
    last_k = k == nk - 1
    init_stats = jnp.logical_and(last_k, p == 0)

    @pl.when(first_k)
    def _():
        acc_ref[...] = jnp.zeros_like(acc_ref)

    if w_resident:
        w = w_ref[k]                     # (Cp, TK), dynamic leading-axis index
    else:
        w = w_ref[...]
    acc_ref[...] += jnp.dot(w, x_ref[...], preferred_element_type=jnp.float32)

    @pl.when(init_stats)
    def _():
        ssum_ref[...] = jnp.zeros_like(ssum_ref)
        ssq_ref[...] = jnp.zeros_like(ssq_ref)

    @pl.when(last_k)
    def _():
        y = acc_ref[...]
        ssum_ref[...] += jnp.sum(y, axis=1, keepdims=True)
        ssq_ref[...] += jnp.sum(y * y, axis=1, keepdims=True)
        y_ref[...] = y.astype(y_ref.dtype)


def _norm_lrelu_kernel(y_ref, ssum_ref, ssq_ref, o_ref, *, inv_p, c_out, eps, slope):
    # y_ref: (Cp, TP2) bf16   ssum/ssq: (Cp, 1) f32   o_ref: (C_out, TP2)
    y = y_ref[...].astype(jnp.float32)
    mean = ssum_ref[...] * inv_p                          # (Cp, 1)
    var = jnp.maximum(ssq_ref[...] * inv_p - mean * mean, 0.0)
    yn = (y - mean) * lax.rsqrt(var + eps)
    out = jnp.where(yn >= 0, yn, slope * yn)
    o_ref[...] = out[:c_out, :].astype(o_ref.dtype)


def _pick_tile(total, target, quantum):
    """Largest tile <= target dividing `total`, preferring multiples of `quantum`."""
    if total <= target:
        return total
    t = (target // quantum) * quantum
    while t >= quantum:
        if total % t == 0:
            return t
        t -= quantum
    for t in range(min(target, total), 0, -1):            # unaligned fallback
        if total % t == 0:
            return t
    return total


def unet_down(x, weight, *, tp=2048, tk=512, tp2=8192, eps=1e-5, slope=0.2,
              w_resident=None):
    """UNetDown forward (eval mode).
    x: (N, C_in, D, H, W) f32, weight: (C_out, C_in, 4, 4, 4) f32 (no bias)."""
    N, C_in, D, H, W = x.shape
    C_out = weight.shape[0]
    K = C_in * 64

    patches, (Do, Ho, Wo) = _im2col_3d_bf16(x)            # (N, K, P) bf16
    P = Do * Ho * Wo

    tp = _pick_tile(P, tp, 128)
    tk = _pick_tile(K, tk, 128)
    tp2 = _pick_tile(P, tp2, 128)
    assert P % tp == 0 and K % tk == 0 and P % tp2 == 0, (P, tp, tp2, K, tk)
    n_p, n_k, n_p2 = P // tp, K // tk, P // tp2

    # Pad C_out to a multiple of 16 (bf16 sublane tile); padded rows are zero.
    cp = ((C_out + 15) // 16) * 16
    w_bf = jnp.pad(weight.reshape(C_out, K).astype(jnp.bfloat16),
                   ((0, cp - C_out), (0, 0)))             # (cp, K)

    if w_resident is None:
        w_resident = cp * K * 2 <= 8 * 1024 * 1024        # keep whole W in VMEM
    if w_resident:
        w_arg = w_bf.reshape(cp, n_k, tk).transpose(1, 0, 2)   # (n_k, cp, tk)
        w_spec = pl.BlockSpec((n_k, cp, tk), lambda n, p, k: (0, 0, 0))
    else:
        w_arg = w_bf
        w_spec = pl.BlockSpec((cp, tk), lambda n, p, k: (0, k))

    vmem_limit = 40 * 1024 * 1024        # leave headroom on v7x (64 MiB / core)

    # Pass 1: lane-dense conv-as-matmul  W (cp,K) @ patches (K,P)  tiled over
    # (N, P, K) with an f32 VMEM accumulator, bf16 conv intermediate, and f32
    # per-channel sum / sum-of-squares accumulated across all P tiles.
    conv, ssum, ssq = pl.pallas_call(
        functools.partial(_conv_stats_kernel, w_resident=w_resident),
        out_shape=(
            jax.ShapeDtypeStruct((N, cp, P), jnp.bfloat16),
            jax.ShapeDtypeStruct((N, cp, 1), jnp.float32),
            jax.ShapeDtypeStruct((N, cp, 1), jnp.float32),
        ),
        grid_spec=pltpu.PrefetchScalarGridSpec(
            num_scalar_prefetch=0,
            grid=(N, n_p, n_k),
            in_specs=[
                pl.BlockSpec((None, tk, tp), lambda n, p, k: (n, k, p)),
                w_spec,
            ],
            out_specs=(
                pl.BlockSpec((None, cp, tp), lambda n, p, k: (n, 0, p)),
                pl.BlockSpec((None, cp, 1), lambda n, p, k: (n, 0, 0)),
                pl.BlockSpec((None, cp, 1), lambda n, p, k: (n, 0, 0)),
            ),
            scratch_shapes=[pltpu.VMEM((cp, tp), jnp.float32)],
        ),
        compiler_params=pltpu.CompilerParams(
            dimension_semantics=("parallel", "arbitrary", "arbitrary"),
            vmem_limit_bytes=vmem_limit,
        ),
    )(patches, w_arg)

    # Pass 2: InstanceNorm (biased variance, full-P statistics) + LeakyReLU(0.2),
    # lane-dense tiles over P; pad channels are dropped inside the kernel.
    out = pl.pallas_call(
        functools.partial(_norm_lrelu_kernel, inv_p=1.0 / P, c_out=C_out,
                          eps=eps, slope=slope),
        out_shape=jax.ShapeDtypeStruct((N, C_out, P), x.dtype),
        grid_spec=pltpu.PrefetchScalarGridSpec(
            num_scalar_prefetch=0,
            grid=(N, n_p2),
            in_specs=[
                pl.BlockSpec((None, cp, tp2), lambda n, p: (n, 0, p)),
                pl.BlockSpec((None, cp, 1), lambda n, p: (n, 0, 0)),
                pl.BlockSpec((None, cp, 1), lambda n, p: (n, 0, 0)),
            ],
            out_specs=pl.BlockSpec((None, C_out, tp2), lambda n, p: (n, 0, p)),
        ),
        compiler_params=pltpu.CompilerParams(
            dimension_semantics=("parallel", "parallel"),
            vmem_limit_bytes=vmem_limit,
        ),
    )(conv, ssum, ssq)

    # (N, C_out, P) -> NCDHW directly (P is already Do*Ho*Wo row-major).
    return out.reshape(N, C_out, Do, Ho, Wo)


def _reference(x, weight, eps=1e-5, slope=0.2):
    # Same bf16 rounding of the matmul operands as the kernel; everything after the
    # conv stays in f32 (the kernel additionally stores the conv intermediate in
    # bf16, which is covered by the comparison tolerance below).
    xb = x.astype(jnp.bfloat16).astype(jnp.float32)
    wb = weight.astype(jnp.bfloat16).astype(jnp.float32)
    y = lax.conv_general_dilated(
        xb, wb, window_strides=(2, 2, 2), padding=[(1, 1)] * 3,
        dimension_numbers=("NCDHW", "OIDHW", "NCDHW"))
    mean = jnp.mean(y, axis=(2, 3, 4), keepdims=True)
    var = jnp.mean((y - mean) ** 2, axis=(2, 3, 4), keepdims=True)
    yn = (y - mean) * lax.rsqrt(var + eps)
    return jnp.where(yn >= 0, yn, slope * yn)


if __name__ == "__main__":
    key = jax.random.PRNGKey(0)
    kx, kw = jax.random.split(key)

    N, C_in, C_out = 2, 4, 8
    D = H = W = 16                       # Conv3d(4,2,1) -> 8x8x8 output, P = 512

    x = jax.random.normal(kx, (N, C_in, D, H, W), dtype=jnp.float32)
    fan_in = C_in * 4 * 4 * 4
    weight = jax.random.normal(kw, (C_out, C_in, 4, 4, 4), dtype=jnp.float32)
    weight = weight * (1.0 / jnp.sqrt(fan_in))

    ref = jax.block_until_ready(_reference(x, weight))
    tol = dict(atol=2e-2, rtol=2e-2)     # covers the bf16 conv-intermediate rounding

    # 1) Default (large) tiles — collapses to one tile per batch step at this size.
    out = jax.block_until_ready(unet_down(x, weight))
    assert out.shape == (N, C_out, D // 2, H // 2, W // 2), out.shape
    err = float(jnp.max(jnp.abs(out - ref)))
    assert jnp.allclose(out, ref, **tol), err

    # 2) Small tiles, resident weight — exercises the K accumulator, the resident
    #    stats block across P tiles and the dynamic per-K weight indexing.
    out2 = jax.block_until_ready(unet_down(x, weight, tp=128, tk=128, tp2=128))
    err2 = float(jnp.max(jnp.abs(out2 - ref)))
    assert jnp.allclose(out2, ref, **tol), err2

    # 3) Small tiles, streamed weight path.
    out3 = jax.block_until_ready(
        unet_down(x, weight, tp=128, tk=128, tp2=256, w_resident=False))
    err3 = float(jnp.max(jnp.abs(out3 - ref)))
    assert jnp.allclose(out3, ref, **tol), err3

    print("KERNEL_OK")
</pallas_src>

<mosaic_0001>
module attributes {stable_mosaic.version = 11 : i64} {
  func.func @_conv_stats_kernel(%arg0: i32, %arg1: i32, %arg2: i32, %arg3: memref<1x256x512xbf16, #tpu.memory_space<vmem>>, %arg4: memref<1x16x256xbf16, #tpu.memory_space<vmem>>, %arg5: memref<1x16x512xbf16, #tpu.memory_space<vmem>>, %arg6: memref<1x16x1xf32, #tpu.memory_space<vmem>>, %arg7: memref<1x16x1xf32, #tpu.memory_space<vmem>>, %arg8: memref<16x512xf32, #tpu.memory_space<vmem>>) attributes {dimension_semantics = [#tpu.dimension_semantics<parallel>, #tpu.dimension_semantics<arbitrary>, #tpu.dimension_semantics<arbitrary>], iteration_bounds = array<i64: 2, 1, 1>, scalar_prefetch = 0 : i64, scratch_operands = 1 : i64, tpu.core_type = #tpu.core_type<tc>, window_params = [{transform_indices = @transform_0, window_bounds = array<i64: 1, 256, 512>}, {pipeline_mode = #tpu.pipeline_mode<synchronous>, transform_indices = @transform_1, window_bounds = array<i64: 1, 16, 256>}, {transform_indices = @transform_2, window_bounds = array<i64: 1, 16, 512>}, {transform_indices = @transform_3, window_bounds = array<i64: 1, 16, 1>}, {transform_indices = @transform_4, window_bounds = array<i64: 1, 16, 1>}]} {
    %c0_i32 = arith.constant 0 : i32
    %0 = arith.cmpi eq, %arg2, %c0_i32 : i32
    %c0_i32_0 = arith.constant 0 : i32
    %1 = arith.cmpi eq, %arg2, %c0_i32_0 : i32
    %c0_i32_1 = arith.constant 0 : i32
    %2 = arith.cmpi eq, %arg1, %c0_i32_1 : i32
    %3 = arith.andi %1, %2 : i1
    %4 = arith.extui %0 : i1 to i32
    %c0_i32_2 = arith.constant 0 : i32
    %5 = arith.cmpi ne, %4, %c0_i32_2 : i32
    scf.if %5 {
      %cst_13 = arith.constant 0.000000e+00 : f32
      %19 = vector.broadcast %cst_13 : f32 to vector<16x512xf32>
      %c0_14 = arith.constant 0 : index
      %c0_15 = arith.constant 0 : index
      %20 = vector.load %arg8[%c0_14, %c0_15] : memref<16x512xf32, #tpu.memory_space<vmem>>, vector<16x512xf32>
      tpu.vector_store %arg8[%c0_14, %c0_15], %19 {strides = array<i32>} : memref<16x512xf32, #tpu.memory_space<vmem>>, vector<16x512xf32>,
    } else {
    }
    %6 = arith.index_cast %arg2 : i32 to index
    %c0 = arith.constant 0 : index
    %c0_3 = arith.constant 0 : index
    %7 = vector.load %arg4[%6, %c0, %c0_3] : memref<1x16x256xbf16, #tpu.memory_space<vmem>>, vector<1x16x256xbf16>
    %8 = vector.shape_cast %7 : vector<1x16x256xbf16> to vector<16x256xbf16>
    %c0_4 = arith.constant 0 : index
    %c0_5 = arith.constant 0 : index
    %9 = vector.load %arg8[%c0_4, %c0_5] : memref<16x512xf32, #tpu.memory_space<vmem>>, vector<16x512xf32>
    %c0_6 = arith.constant 0 : index
    %c0_7 = arith.constant 0 : index
    %c0_8 = arith.constant 0 : index
    %10 = vector.load %arg3[%c0_6, %c0_7, %c0_8] : memref<1x256x512xbf16, #tpu.memory_space<vmem>>, vector<1x256x512xbf16>
    %11 = vector.shape_cast %10 : vector<1x256x512xbf16> to vector<256x512xbf16>
    %cst = arith.constant dense<0.000000e+00> : vector<16x512xf32>
    %12 = tpu.matmul %8, %11, %cst {dimension_numbers = #tpu.dot_dimension_numbers<[1], [0], [0], [1], [0, 0, 1, 1], [], []>} : vector<16x256xbf16>, vector<256x512xbf16>, vector<16x512xf32> -> vector<16x512xf32>
    %13 = arith.addf %9, %12 : vector<16x512xf32>
    %c0_9 = arith.constant 0 : index
    %c0_10 = arith.constant 0 : index
    %14 = vector.load %arg8[%c0_9, %c0_10] : memref<16x512xf32, #tpu.memory_space<vmem>>, vector<16x512xf32>
    tpu.vector_store %arg8[%c0_9, %c0_10], %13 {strides = array<i32>} : memref<16x512xf32, #tpu.memory_space<vmem>>, vector<16x512xf32>,
    %15 = arith.extui %3 : i1 to i32
    %c0_i32_11 = arith.constant 0 : i32
    %16 = arith.cmpi ne, %15, %c0_i32_11 : i32
    scf.if %16 {
      %cst_13 = arith.constant 0.000000e+00 : f32
      %19 = vector.broadcast %cst_13 : f32 to vector<16x1xf32>
      %c0_14 = arith.constant 0 : index
      %c0_15 = arith.constant 0 : index
      %c0_16 = arith.constant 0 : index
      %20 = vector.load %arg6[%c0_14, %c0_15, %c0_16] : memref<1x16x1xf32, #tpu.memory_space<vmem>>, vector<1x16x1xf32>
      %21 = vector.shape_cast %20 : vector<1x16x1xf32> to vector<16x1xf32>
      %22 = vector.shape_cast %19 : vector<16x1xf32> to vector<1x16x1xf32>
      tpu.vector_store %arg6[%c0_14, %c0_15, %c0_16], %22 {strides = array<i32>} : memref<1x16x1xf32, #tpu.memory_space<vmem>>, vector<1x16x1xf32>,
      %cst_17 = arith.constant 0.000000e+00 : f32
      %23 = vector.broadcast %cst_17 : f32 to vector<16x1xf32>
      %c0_18 = arith.constant 0 : index
      %c0_19 = arith.constant 0 : index
      %c0_20 = arith.constant 0 : index
      %24 = vector.load %arg7[%c0_18, %c0_19, %c0_20] : memref<1x16x1xf32, #tpu.memory_space<vmem>>, vector<1x16x1xf32>
      %25 = vector.shape_cast %24 : vector<1x16x1xf32> to vector<16x1xf32>
      %26 = vector.shape_cast %23 : vector<16x1xf32> to vector<1x16x1xf32>
      tpu.vector_store %arg7[%c0_18, %c0_19, %c0_20], %26 {strides = array<i32>} : memref<1x16x1xf32, #tpu.memory_space<vmem>>, vector<1x16x1xf32>,
    } else {
    }
    %17 = arith.extui %1 : i1 to i32
    %c0_i32_12 = arith.constant 0 : i32
    %18 = arith.cmpi ne, %17, %c0_i32_12 : i32
    scf.if %18 {
      %c0_13 = arith.constant 0 : index
      %c0_14 = arith.constant 0 : index
      %19 = vector.load %arg8[%c0_13, %c0_14] : memref<16x512xf32, #tpu.memory_space<vmem>>, vector<16x512xf32>
      %c0_15 = arith.constant 0 : index
      %c0_16 = arith.constant 0 : index
      %c0_17 = arith.constant 0 : index
      %20 = vector.load %arg6[%c0_15, %c0_16, %c0_17] : memref<1x16x1xf32, #tpu.memory_space<vmem>>, vector<1x16x1xf32>
      %21 = vector.shape_cast %20 : vector<1x16x1xf32> to vector<16x1xf32>
      %cst_18 = arith.constant dense<0.000000e+00> : vector<16xf32>
      %22 = vector.multi_reduction <add>, %19, %cst_18 [1] : vector<16x512xf32> to vector<16xf32>
      %23 = vector.shape_cast %22 : vector<16xf32> to vector<16x1xf32>
      %24 = arith.addf %21, %23 : vector<16x1xf32>
      %c0_19 = arith.constant 0 : index
      %c0_20 = arith.constant 0 : index
      %c0_21 = arith.constant 0 : index
      %25 = vector.load %arg6[%c0_19, %c0_20, %c0_21] : memref<1x16x1xf32, #tpu.memory_space<vmem>>, vector<1x16x1xf32>
      %26 = vector.shape_cast %25 : vector<1x16x1xf32> to vector<16x1xf32>
      %27 = vector.shape_cast %24 : vector<16x1xf32> to vector<1x16x1xf32>
      tpu.vector_store %arg6[%c0_19, %c0_20, %c0_21], %27 {strides = array<i32>} : memref<1x16x1xf32, #tpu.memory_space<vmem>>, vector<1x16x1xf32>,
      %c0_22 = arith.constant 0 : index
      %c0_23 = arith.constant 0 : index
      %c0_24 = arith.constant 0 : index
      %28 = vector.load %arg7[%c0_22, %c0_23, %c0_24] : memref<1x16x1xf32, #tpu.memory_space<vmem>>, vector<1x16x1xf32>
      %29 = vector.shape_cast %28 : vector<1x16x1xf32> to vector<16x1xf32>
      %30 = arith.mulf %19, %19 : vector<16x512xf32>
      %cst_25 = arith.constant dense<0.000000e+00> : vector<16xf32>
      %31 = vector.multi_reduction <add>, %30, %cst_25 [1] : vector<16x512xf32> to vector<16xf32>
      %32 = vector.shape_cast %31 : vector<16xf32> to vector<16x1xf32>
      %33 = arith.addf %29, %32 : vector<16x1xf32>
      %c0_26 = arith.constant 0 : index
      %c0_27 = arith.constant 0 : index
      %c0_28 = arith.constant 0 : index
      %34 = vector.load %arg7[%c0_26, %c0_27, %c0_28] : memref<1x16x1xf32, #tpu.memory_space<vmem>>, vector<1x16x1xf32>
      %35 = vector.shape_cast %34 : vector<1x16x1xf32> to vector<16x1xf32>
      %36 = vector.shape_cast %33 : vector<16x1xf32> to vector<1x16x1xf32>
      tpu.vector_store %arg7[%c0_26, %c0_27, %c0_28], %36 {strides = array<i32>} : memref<1x16x1xf32, #tpu.memory_space<vmem>>, vector<1x16x1xf32>,
      %37 = arith.truncf %19 : vector<16x512xf32> to vector<16x512xbf16>
      %c0_29 = arith.constant 0 : index
      %c0_30 = arith.constant 0 : index
      %c0_31 = arith.constant 0 : index
      %38 = vector.load %arg5[%c0_29, %c0_30, %c0_31] : memref<1x16x512xbf16, #tpu.memory_space<vmem>>, vector<1x16x512xbf16>
      %39 = vector.shape_cast %38 : vector<1x16x512xbf16> to vector<16x512xbf16>
      %40 = vector.shape_cast %37 : vector<16x512xbf16> to vector<1x16x512xbf16>
      tpu.vector_store %arg5[%c0_29, %c0_30, %c0_31], %40 {strides = array<i32>} : memref<1x16x512xbf16, #tpu.memory_space<vmem>>, vector<1x16x512xbf16>,
    } else {
    }
    return
  }
  func.func @transform_0(%arg0: i32, %arg1: i32, %arg2: i32) -> (i32, i32, i32) {
    %c0_i32 = arith.constant 0 : i32
    return %arg0, %arg2, %arg1 : i32, i32, i32
  }
  func.func @transform_1(%arg0: i32, %arg1: i32, %arg2: i32) -> (i32, i32, i32) {
    %c0_i32 = arith.constant 0 : i32
    %c0_i32_0 = arith.constant 0 : i32
    %c0_i32_1 = arith.constant 0 : i32
    %c0_i32_2 = arith.constant 0 : i32
    return %c0_i32, %c0_i32_0, %c0_i32_1 : i32, i32, i32
  }
  func.func @transform_2(%arg0: i32, %arg1: i32, %arg2: i32) -> (i32, i32, i32) {
    %c0_i32 = arith.constant 0 : i32
    %c0_i32_0 = arith.constant 0 : i32
    return %arg0, %c0_i32, %arg1 : i32, i32, i32
  }
  func.func @transform_3(%arg0: i32, %arg1: i32, %arg2: i32) -> (i32, i32, i32) {
    %c0_i32 = arith.constant 0 : i32
    %c0_i32_0 = arith.constant 0 : i32
    %c0_i32_1 = arith.constant 0 : i32
    return %arg0, %c0_i32, %c0_i32_0 : i32, i32, i32
  }
  func.func @transform_4(%arg0: i32, %arg1: i32, %arg2: i32) -> (i32, i32, i32) {
    %c0_i32 = arith.constant 0 : i32
    %c0_i32_0 = arith.constant 0 : i32
    %c0_i32_1 = arith.constant 0 : i32
    return %arg0, %c0_i32, %c0_i32_0 : i32, i32, i32
  }
}

</mosaic_0001>

<bundles_post_ra>
// kernel: tpu_custom_call.1
= control target key start
LH: loop header
LB: loop body
LE: loop exit
PB: predicated region body
PF: predicated region fallthrough
CT: control target
= control target key end

     0   :  { %s1833_s0 = inlined_call_operand.hbm [shape: bf16[2,256,512], index: 0, kind: input, shape index: {}]   ;;  %s1834_s1 = inlined_call_operand.hbm [shape: bf16[1,16,256], index: 1, kind: input, shape index: {}]   ;;  %s1835_s2 = inlined_call_operand.hbm [shape: bf16[2,16,512], index: 2, kind: output, shape index: {0}]   ;;  %s1836_s3 = inlined_call_operand.vmem [shape: f32[2,16,1], index: 3, kind: output, shape index: {1}]   ;;  %s1837_s4 = inlined_call_operand.vmem [shape: f32[2,16,1], index: 4, kind: output, shape index: {2}]  }
   0x1   :  { %1839 = sst [smem:[#allocation12_spill]] %s1834_s1 }
   0x2   :  { %10 = vsyncpa [#allocation4], 0 }
   0x3   :  { %12 = vsyncpa [#allocation4 + $0x1], 0 }
   0x4   :  { %13 = vsyncpa [#allocation7], 0 }
   0x5   :  { %14 = vsyncpa [#allocation5], 0 }
   0x6   :  { %16 = vsyncpa [#allocation5 + $0x1], 0  ;;  %s1539_s15 = smov 0   ;;  %s1541_s16 = smov 0  }
   0x7   :  { %s1543_s17 = smov 0   ;;  %s1545_s18 = smov 0  }
   0x8   :  { %s1547_s19 = smov 0   ;;  %s1549_s20 = smov 0  }
   0x9 LB: > { %s1086_s21 = sadd.s32 4294967295, %s1502_s20   ;;  %s1087_s22 = sadd.s32 4294967294, %s1502_s20   ;;  %s1502_s20 = sphi %s1549_s20, %s22_s20   ;;  %s1498_s19 = sphi %s1547_s19, %s1857_s19   ;;  %s1494_s18 = sphi %s1545_s18, %s1856_s18   ;;  %s1490_s17 = sphi %s1543_s17, %s1855_s17   ;;  %s1486_s16 = sphi %s1541_s16, %s1854_s16   ;;  %s1482_s15 = sphi %s1539_s15, %s1853_s15  }
   0xa   : > { %p65_p0 = scmp.ne.s32.totalorder %s1486_s16, %s1482_s15  ;;  %p1573_p1 = scmp.eq.s32.totalorder %s1086_s21, 0 }
   0xb   : > { %p1577_p2 = scmp.eq.s32.totalorder %s1086_s21, 1  ;;  %p118_p3 = scmp.eq.s32.totalorder %s1087_s22, 1 }
   0xc   : > { %p1583_p4 = por %p1573_p1, %p65_p0  ;;  %p1088_p5 = scmp.ge.s32.totalorder %s1502_s20, 1 }
   0xd   : > { %p1588_p6 = por %p118_p3, %p65_p0  ;;  %p177_p7 = scmp.lt.s32.totalorder %s1502_s20, 3 }
   0xe   : > { %s1842_s25 = scalar_select %p1583_p4, 1, 0 }
   0xf   : > { %s1843_s26 = scalar_select %p1588_p6, 1, 0 }
  0x10   : > { %p1593_p8 = pnand %p1088_p5, %p177_p7  ;;  %s1504_s28 = smov [#allocation6]  }
  0x11   : > { %s189_s29 = sshll.u32 %s1504_s28, 4  ;;  %s41_s5 = sadd.s32 1, %s1498_s19  ;;  %s190_s29 = int_to_ptr.vmem [resolvable:$true] %s189_s29 }
  0x12   : > { %p1193_p9 = pneg %p1593_p8  ;;  %s1375_s6 = scalar_lea.vmem %s190_s29, 256 }
  0x13   : > { %p1376_p13 = scmp.ne.s32.totalorder %s190_s29, %s1375_s6  ;;  %p1383_p5 = scmp.lt.s32.totalorder %s190_s29, %s190_s29 }
  0x14   : > { %p1602_p11 = pnand %p1193_p9, %p1573_p1  ;;  %p1384_p7 = scmp.lt.s32.totalorder %s1375_s6, %s1375_s6 }
  0x16   : > { %p1366_p12 = pneg %p1602_p11  ;;  %p1385_p6 = por %p1384_p7, %p1383_p5 }
  0x18   : > { %p1378_p0 = pnand %p1376_p13, %p1366_p12 }
  0x1a   : > { %p1379_p3 = pneg %p1378_p0 }
  0x1c   : > { %p1386_p4 = pnand %p1385_p6, %p1379_p3 }
  0x1e   : > { %1389 = shalt.err (!%p1386_p4)
}
  0x1f   : > { %s1505_s7 = smov 128   ;;  %s1506_s8 = smov 8  }
  0x20   : > { %s1846_s1 = sld [smem:[#allocation12_spill]]  ;;  %p43_p6 = scmp.ge.s32.totalorder %s41_s5, 2 }
  0x21   : > { %s52_s11 = sadd.s32 1, %s1490_s17  ;;  %p59_p4 = scmp.ne.s32.totalorder %s1490_s17, %s1486_s16 }
  0x22   : > { %p60_p9 = scmp.eq.s32.totalorder %s1502_s20, 0  ;;  %s1859_s5 = smov (%p43_p6, %s41_s5), 0 }
  0x23   : > { %p1626_p13 = por %p1577_p2, %p59_p4  ;;  %s45_s14 = ssub.s32 %s1498_s19, %s1859_s5 }
  0x24   : > { %p1620_p12 = por %p60_p9, %p59_p4  ;;  %p1206_p0 = scmp.lt.s32.totalorder %s1502_s20, 2 }
  0x25   : > { %s203_s21 = sand.u32 1, %s1490_s17  }
  0x26   : > { %1196 = dma.hbm_to_vmem [thread:$0]  (!%p1602_p11), %s1846_s1, 256, %s190_s29, [#allocation7], %s1505_s7, %s1505_s7, %s1506_s8  }
  0x27   : > { %p50_p11 = scmp.eq.s32.totalorder %s45_s14, 0  ;;  %s1091_s22 = sshll.u32 %s203_s21, 9 }
  0x28   : > { %s1177_s29 = sshll.u32 %s1498_s19, 13  ;;  %s207_s8 = scalar_lea.vmem [#allocation3], %s1091_s22 }
  0x29   : > { %s1635_s28 = scalar_select %p50_p11, %s1490_s17, %s52_s11  }
  0x2a   : > { %s218_s7 = scalar_lea.hbm %s1833_s0, %s1177_s29  ;;  %s219_s9 = sshll.u32 %s207_s8, 4  ;;  %s220_s9 = int_to_ptr.vmem [resolvable:$true] %s219_s9 }
  0x2b   : > { %p1643_p2 = pnand %p1206_p0, %p1620_p12  ;;  %s204_s10 = scalar_lea.sflag [#allocation4], %s203_s21 }
  0x2c   : > { %s1403_s14 = scalar_lea.vmem %s220_s9, 8192  ;;  %s1507_s11 = smov [#allocation3]  }
  0x2d   : > { %p1392_p3 = pneg %p1643_p2  ;;  %p1404_p5 = scmp.ne.s32.totalorder %s220_s9, %s1403_s14 }
  0x2e   : > { %s1408_s1 = sshll.u32 %s1507_s11, 4  ;;  %s1409_s1 = int_to_ptr.vmem [resolvable:$false] %s1408_s1 }
  0x2f   : > { %p1406_p7 = pnand %p1404_p5, %p1392_p3  ;;  %s1410_s29 = scalar_lea.vmem %s1409_s1, 16384 }
  0x30   : > { %p1411_p4 = scmp.lt.s32.totalorder %s220_s9, %s1409_s1  ;;  %p1412_p9 = scmp.lt.s32.totalorder %s1410_s29, %s1403_s14 }
  0x31   : > { %p1407_p6 = pneg %p1406_p7 }
  0x32   : > { %p1413_p11 = por %p1412_p9, %p1411_p4 }
  0x34   : > { %p1414_p10 = pnand %p1413_p11, %p1407_p6 }
  0x36   : > { %1417 = shalt.err (!%p1414_p10)
}
  0x37   : > { %s1508_s12 = smov 256   ;;  %s1509_s22 = smov 16  }
  0x38   : > { %1200 = dma.hbm_to_vmem [thread:$0]  (!%p1643_p2), %s218_s7, 8192, %s220_s9, %s204_s10, %s1508_s12, %s1508_s12, %s1509_s22  }
  0x39   : > { %231 = sbr.rel (%p1593_p8) target bundleno = 479 (0x1df), region = 28  ;;  %s1654_s21 = sand.u32 (!%p1593_p8), 1, %s1486_s16  }
  0x3a   : > { %s1095_s30 = sshll.u32 (!%p1593_p8), %s1654_s21, 9  ;;  %s234_s1 = scalar_lea.sflag (!%p1593_p8), [#allocation4], %s1654_s21 }
  0x3b   : > { %s1658_s6 = scalar_lea.vmem (!%p1593_p8), [#allocation3], %s1095_s30  ;;  %p1850_p12 = scmp.ne.s32.totalorder (!%p1593_p8), %s1842_s25, 0 }
  0x3e   : > { %1469 = dma.done.wait (%p1850_p12), %s234_s1, 8192  }
  0x3f   : > { %1471 = vsyncadd (%p1850_p12), %s234_s1, 4294959104 }
  0x40   : > { %1473 = dma.done.wait (%p1573_p1), [#allocation7], 256  }
  0x41   : > { %1475 = vsyncadd (%p1573_p1), [#allocation7], 4294967040  ;;  %v1265_v0 = vld [vmem:[%s1658_s6 + $0xe4] ss:$16 sps:$4 sm:$0xff]   ;;  %v1267_v1 = vld [vmem:[%s1658_s6 + $0xec] ss:$16 sps:$4 sm:$0xff]  }
  0x42   : > { %711 = vmatprep.subr.bf16.mxu0 %v1265_v0  ;;  %v1269_v2 = vld [vmem:[%s1658_s6 + $0xe0] ss:$16 sps:$4 sm:$0xff]   ;;  %v1270_v3 = vld [vmem:[%s1658_s6 + $0xe8] ss:$16 sps:$4 sm:$0xff]   ;;  %754 = vmatprep.subr.bf16.mxu1 %v1267_v1  ;;  %v1271_v4 = vld [vmem:[%s1658_s6 + $0xc4] ss:$16 sps:$4 sm:$0xff]  }
  0x43   : > { %712 = vmatpush1.bf16.msra.mxu0 %v1269_v2  ;;  %755 = vmatpush1.bf16.msra.mxu1 %v1270_v3  ;;  %v1273_v5 = vld [vmem:[%s1658_s6 + $0xcc] ss:$16 sps:$4 sm:$0xff]   ;;  %v1275_v6 = vld [vmem:[%s1658_s6 + $0xc0] ss:$16 sps:$4 sm:$0xff]   ;;  %v1276_v7 = vld [vmem:[%s1658_s6 + $0xc8] ss:$16 sps:$4 sm:$0xff]  }
  0x44   : > { %713 = vmatprep.subr.bf16.mxu0 %v1271_v4  ;;  %756 = vmatprep.subr.bf16.mxu1 %v1273_v5  ;;  %v1277_v8 = vld [vmem:[%s1658_s6 + $0xa4] ss:$16 sps:$4 sm:$0xff]   ;;  %v1279_v9 = vld [vmem:[%s1658_s6 + $0xac] ss:$16 sps:$4 sm:$0xff]   ;;  %v1281_v10 = vld [vmem:[%s1658_s6 + $0xa0] ss:$16 sps:$4 sm:$0xff]  }
  0x45   : > { %v1282_v11 = vld [vmem:[%s1658_s6 + $0xa8] ss:$16 sps:$4 sm:$0xff]   ;;  %v1283_v12 = vld [vmem:[%s1658_s6 + $0x84] ss:$16 sps:$4 sm:$0xff]   ;;  %v1285_v13 = vld [vmem:[%s1658_s6 + $0x8c] ss:$16 sps:$4 sm:$0xff]  }
  0x46   : > { %v1287_v14 = vld [vmem:[%s1658_s6 + $0x80] ss:$16 sps:$4 sm:$0xff]   ;;  %v1288_v15 = vld [vmem:[%s1658_s6 + $0x88] ss:$16 sps:$4 sm:$0xff]   ;;  %v1289_v16 = vld [vmem:[%s1658_s6 + $0x64] ss:$16 sps:$4 sm:$0xff]  }
  0x47   : > { %714 = vmatpush1.bf16.msra.mxu0 %v1275_v6  ;;  %757 = vmatpush1.bf16.msra.mxu1 %v1276_v7  ;;  %v1291_v17 = vld [vmem:[%s1658_s6 + $0x6c] ss:$16 sps:$4 sm:$0xff]   ;;  %v1293_v18 = vld [vmem:[%s1658_s6 + $0x60] ss:$16 sps:$4 sm:$0xff]   ;;  %v1294_v19 = vld [vmem:[%s1658_s6 + $0x68] ss:$16 sps:$4 sm:$0xff]  }
  0x48   : > { %715 = vmatprep.subr.bf16.mxu0 %v1277_v8  ;;  %758 = vmatprep.subr.bf16.mxu1 %v1279_v9  ;;  %v1295_v20 = vld [vmem:[%s1658_s6 + $0x44] ss:$16 sps:$4 sm:$0xff]   ;;  %v1297_v21 = vld [vmem:[%s1658_s6 + $0x4c] ss:$16 sps:$4 sm:$0xff]   ;;  %v1299_v22 = vld [vmem:[%s1658_s6 + $0x40] ss:$16 sps:$4 sm:$0xff]  }
  0x49   : > { %v1300_v23 = vld [vmem:[%s1658_s6 + $0x48] ss:$16 sps:$4 sm:$0xff]   ;;  %v1301_v24 = vld [vmem:[%s1658_s6 + $0x24] ss:$16 sps:$4 sm:$0xff]   ;;  %v1303_v25 = vld [vmem:[%s1658_s6 + $0x2c] ss:$16 sps:$4 sm:$0xff]  }
  0x4a   : > { %v1305_v26 = vld [vmem:[%s1658_s6 + $0x20] ss:$16 sps:$4 sm:$0xff]   ;;  %v1306_v27 = vld [vmem:[%s1658_s6 + $0x28] ss:$16 sps:$4 sm:$0xff]   ;;  %v1307_v28 = vld [vmem:[%s1658_s6 + $0x4] ss:$16 sps:$4 sm:$0xff]  }
  0x4b   : > { %716 = vmatpush1.bf16.msra.mxu0 %v1281_v10  ;;  %759 = vmatpush1.bf16.msra.mxu1 %v1282_v11  ;;  %v1309_v29 = vld [vmem:[%s1658_s6 + $0xc] ss:$16 sps:$4 sm:$0xff]   ;;  %v1311_v30 = vld [vmem:[%s1658_s6] ss:$16 sps:$4 sm:$0xff]   ;;  %v1312_v31 = vld [vmem:[%s1658_s6 + $0x8] ss:$16 sps:$4 sm:$0xff]  }
  0x4c   : > { %717 = vmatprep.subr.bf16.mxu0 %v1283_v12  ;;  %760 = vmatprep.subr.bf16.mxu1 %v1285_v13  ;;  %v1313_v32 = vld [vmem:[%s1658_s6 + $0x1e4] ss:$16 sps:$4 sm:$0xff]   ;;  %v1315_v33 = vld [vmem:[%s1658_s6 + $0x1ec] ss:$16 sps:$4 sm:$0xff]   ;;  %v1317_v34 = vld [vmem:[%s1658_s6 + $0x1e0] ss:$16 sps:$4 sm:$0xff]  }
  0x4d   : > { %v1318_v35 = vld [vmem:[%s1658_s6 + $0x1e8] ss:$16 sps:$4 sm:$0xff]   ;;  %v1319_v36 = vld [vmem:[%s1658_s6 + $0x1c4] ss:$16 sps:$4 sm:$0xff]   ;;  %v1321_v37 = vld [vmem:[%s1658_s6 + $0x1cc] ss:$16 sps:$4 sm:$0xff]  }
  0x4e   : > { %v1323_v38 = vld [vmem:[%s1658_s6 + $0x1c0] ss:$16 sps:$4 sm:$0xff]   ;;  %v1324_v39 = vld [vmem:[%s1658_s6 + $0x1c8] ss:$16 sps:$4 sm:$0xff]   ;;  %v1325_v40 = vld [vmem:[%s1658_s6 + $0x1a4] ss:$16 sps:$4 sm:$0xff]  }
  0x4f   : > { %718 = vmatpush1.bf16.msra.mxu0 %v1287_v14  ;;  %761 = vmatpush1.bf16.msra.mxu1 %v1288_v15  ;;  %v1327_v41 = vld [vmem:[%s1658_s6 + $0x1ac] ss:$16 sps:$4 sm:$0xff]   ;;  %v1329_v42 = vld [vmem:[%s1658_s6 + $0x1a0] ss:$16 sps:$4 sm:$0xff]   ;;  %v1330_v43 = vld [vmem:[%s1658_s6 + $0x1a8] ss:$16 sps:$4 sm:$0xff]  }
  0x50   : > { %719 = vmatprep.subr.bf16.mxu0 %v1289_v16  ;;  %762 = vmatprep.subr.bf16.mxu1 %v1291_v17  ;;  %v1331_v44 = vld [vmem:[%s1658_s6 + $0x184] ss:$16 sps:$4 sm:$0xff]   ;;  %v1333_v45 = vld [vmem:[%s1658_s6 + $0x18c] ss:$16 sps:$4 sm:$0xff]   ;;  %v1335_v47 = vld [vmem:[%s1658_s6 + $0x180] ss:$16 sps:$4 sm:$0xff]  }
  0x51   : > { %v1363_v46 = vld [vmem:[#allocation6 + $0x4] ss:$8 sps:$4 sm:$0xff]   ;;  %v1336_v48 = vld [vmem:[%s1658_s6 + $0x188] ss:$16 sps:$4 sm:$0xff]   ;;  %v1341_v51 = vld [vmem:[%s1658_s6 + $0x160] ss:$16 sps:$4 sm:$0xff]  }
  0x52   : > { %v1337_v49 = vld [vmem:[%s1658_s6 + $0x164] ss:$16 sps:$4 sm:$0xff]   ;;  %v1339_v50 = vld [vmem:[%s1658_s6 + $0x16c] ss:$16 sps:$4 sm:$0xff]   ;;  %743 = vmatprep.mubr.bf16.mxu0 %v1363_v46  ;;  %786 = vmatprep.mubr.bf16.mxu1 %v1363_v46  ;;  %v1342_v52 = vld [vmem:[%s1658_s6 + $0x168] ss:$16 sps:$4 sm:$0xff]  }
  0x53   : > { %720 = vmatpush1.bf16.msra.mxu0 %v1293_v18  ;;  %763 = vmatpush1.bf16.msra.mxu1 %v1294_v19  ;;  %v1343_v53 = vld [vmem:[%s1658_s6 + $0x144] ss:$16 sps:$4 sm:$0xff]   ;;  %v1345_v54 = vld [vmem:[%s1658_s6 + $0x14c] ss:$16 sps:$4 sm:$0xff]   ;;  %v1347_v55 = vld [vmem:[%s1658_s6 + $0x140] ss:$16 sps:$4 sm:$0xff]  }
  0x54   : > { %721 = vmatprep.subr.bf16.mxu0 %v1295_v20  ;;  %764 = vmatprep.subr.bf16.mxu1 %v1297_v21  ;;  %v1348_v56 = vld [vmem:[%s1658_s6 + $0x148] ss:$16 sps:$4 sm:$0xff]   ;;  %v1349_v57 = vld [vmem:[%s1658_s6 + $0x124] ss:$16 sps:$4 sm:$0xff]   ;;  %v1351_v58 = vld [vmem:[%s1658_s6 + $0x12c] ss:$16 sps:$4 sm:$0xff]  }
  0x55   : > { %v1353_v59 = vld [vmem:[%s1658_s6 + $0x120] ss:$16 sps:$4 sm:$0xff]   ;;  %v1354_v60 = vld [vmem:[%s1658_s6 + $0x128] ss:$16 sps:$4 sm:$0xff]   ;;  %v1355_v61 = vld [vmem:[%s1658_s6 + $0x104] ss:$16 sps:$4 sm:$0xff]  }
  0x56   : > { %v1357_v62 = vld [vmem:[%s1658_s6 + $0x10c] ss:$16 sps:$4 sm:$0xff]   ;;  %v1359_v63 = vld [vmem:[%s1658_s6 + $0x100] ss:$16 sps:$4 sm:$0xff]   ;;  %v1360_v0 = vld [vmem:[%s1658_s6 + $0x108] ss:$16 sps:$4 sm:$0xff]  }
  0x57   : > { %722 = vmatpush1.bf16.msra.mxu0 %v1299_v22  ;;  %765 = vmatpush1.bf16.msra.mxu1 %v1300_v23  ;;  %v1361_v1 = vld [vmem:[#allocation6] ss:$8 sps:$4 sm:$0xff]   ;;  %p279_p1 = scmp.lt.s32.totalorder %s1494_s18, 1  ;;  %vm815_vm0 = vcmask 7168   ;;  %v1510_v2 = vmov 0.0   ;;  %s1097_s9 = sshll.u32 %s1654_s21, 5 }
  0x58   : > { %723 = vmatprep.subr.bf16.mxu0 %v1301_v24  ;;  %766 = vmatprep.subr.bf16.mxu1 %v1303_v25  ;;  %s1749_s24 = scalar_lea.vmem [#allocation8], %s1097_s9  ;;  %s1184_s12 = sshll.u32 %s1494_s18, 9 }
  0x59   : > { %s1734_s23 = scalar_select %p279_p1, %s1494_s18, 1 }
  0x5a   : > { %s926_s29 = sshll.u32 %s1749_s24, 4  ;;  %s1773_s1 = scalar_lea.hbm %s1835_s2, %s1184_s12  ;;  %s1767_s29 = int_to_ptr.vmem [resolvable:$true] %s926_s29 }
  0x5b   : > { %724 = vmatpush1.bf16.msra.mxu0 %v1305_v26  ;;  %767 = vmatpush1.bf16.msra.mxu1 %v1306_v27  ;;  %s1178_s25 = sshll.u32 %s1734_s23, 4  ;;  %s901_s6 = scalar_lea.sflag [#allocation5], %s1654_s21 }
  0x5c   : > { %725 = vmatprep.subr.bf16.mxu0 %v1307_v28  ;;  %768 = vmatprep.subr.bf16.mxu1 %v1309_v29  ;;  %s1742_s8 = scalar_lea.vmem %s1836_s3, %s1178_s25  ;;  %s1760_s11 = scalar_lea.vmem %s1837_s4, %s1178_s25 }
  0x5d   : > { %816 = vst.msk [vmem:[%s1742_s8] sm:$0xff] %vm815_vm0, %v1510_v2  ;;  %817 = vst.msk [vmem:[%s1742_s8 + $0x8] sm:$0xff] %vm815_vm0, %v1510_v2  ;;  %s1418_s23 = scalar_lea.vmem %s1767_s29, 512  ;;  %s1511_s25 = smov [#allocation8]  }
  0x5e   : > { %818 = vst.msk [vmem:[%s1760_s11] sm:$0xff] %vm815_vm0, %v1510_v2  ;;  %819 = vst.msk [vmem:[%s1760_s11 + $0x8] sm:$0xff] %vm815_vm0, %v1510_v2  ;;  %p1419_p8 = scmp.ne.s32.totalorder %s1767_s29, %s1418_s23  ;;  %s1422_s27 = sshll.u32 %s1511_s25, 4  ;;  %s1423_s27 = int_to_ptr.vmem [resolvable:$false] %s1422_s27 }
  0x5f   : > { %726 = vmatpush1.bf16.msra.mxu0 %v1311_v30  ;;  %769 = vmatpush1.bf16.msra.mxu1 %v1312_v31  ;;  %s1424_s7 = scalar_lea.vmem %s1423_s27, 1024  ;;  %p1425_p2 = scmp.lt.s32.totalorder %s1767_s29, %s1423_s27 }
  0x60   : > { %727 = vmatprep.subr.bf16.mxu0 %v1313_v32  ;;  %770 = vmatprep.subr.bf16.mxu1 %v1315_v33  ;;  %p1420_p10 = pnand %p1419_p8, %p1626_p13  ;;  %p1426_p3 = scmp.lt.s32.totalorder %s1424_s7, %s1418_s23 }
  0x62   : > { %p1421_p0 = pneg %p1420_p10  ;;  %p1427_p5 = por %p1426_p3, %p1425_p2 }
  0x63   : > { %728 = vmatpush2.bf16.msra.mxu0 %v1317_v34  ;;  %771 = vmatpush2.bf16.msra.mxu1 %v1318_v35 }
  0x64   : > { %729 = vmatprep.subr.bf16.mxu0 %v1319_v36  ;;  %772 = vmatprep.subr.bf16.mxu1 %v1321_v37  ;;  %p1428_p7 = pnand %p1427_p5, %p1421_p0 }
  0x67   : > { %730 = vmatpush2.bf16.msra.mxu0 %v1323_v38  ;;  %773 = vmatpush2.bf16.msra.mxu1 %v1324_v39 }
  0x68   : > { %731 = vmatprep.subr.bf16.mxu0 %v1325_v40  ;;  %774 = vmatprep.subr.bf16.mxu1 %v1327_v41 }
  0x6b   : > { %732 = vmatpush2.bf16.msra.mxu0 %v1329_v42  ;;  %775 = vmatpush2.bf16.msra.mxu1 %v1330_v43 }
  0x6c   : > { %733 = vmatprep.subr.bf16.mxu0 %v1331_v44  ;;  %776 = vmatprep.subr.bf16.mxu1 %v1333_v45 }
  0x6f   : > { %734 = vmatpush2.bf16.msra.mxu0 %v1335_v47  ;;  %777 = vmatpush2.bf16.msra.mxu1 %v1336_v48 }
  0x70   : > { %735 = vmatprep.subr.bf16.mxu0 %v1337_v49  ;;  %778 = vmatprep.subr.bf16.mxu1 %v1339_v50 }
  0x73   : > { %736 = vmatpush2.bf16.msra.mxu0 %v1341_v51  ;;  %779 = vmatpush2.bf16.msra.mxu1 %v1342_v52 }
  0x74   : > { %737 = vmatprep.subr.bf16.mxu0 %v1343_v53  ;;  %780 = vmatprep.subr.bf16.mxu1 %v1345_v54 }
  0x77   : > { %738 = vmatpush2.bf16.msra.mxu0 %v1347_v55  ;;  %781 = vmatpush2.bf16.msra.mxu1 %v1348_v56 }
  0x78   : > { %739 = vmatprep.subr.bf16.mxu0 %v1349_v57  ;;  %782 = vmatprep.subr.bf16.mxu1 %v1351_v58 }
  0x7b   : > { %740 = vmatpush2.bf16.msra.mxu0 %v1353_v59  ;;  %783 = vmatpush2.bf16.msra.mxu1 %v1354_v60 }
  0x7c   : > { %741 = vmatprep.subr.bf16.mxu0 %v1355_v61  ;;  %784 = vmatprep.subr.bf16.mxu1 %v1357_v62 }
  0x7f   : > { %742 = vmatpush2.bf16.msra.mxu0 %v1359_v63  ;;  %785 = vmatpush2.bf16.msra.mxu1 %v1360_v0 }
  0x82   : > { %744 = vmatmul.mubr.bf16.vlgmr.msra.gmra.mxu0 %v1361_v1  ;;  %787 = vmatmul.mubr.bf16.vlgmr.msra.gmra.mxu1 %v1361_v1 }
 0x142   : > { %v745_v3 = vpop.f32.mrf.mxu0  ;;  %v788_v4 = vpop.f32.mrf.mxu1 }
 0x143   : > { %v850_v5 = vmul.f32 %v745_v3, %v745_v3  ;;  %v852_v12 = vmul.f32 %v788_v4, %v788_v4 }
 0x144   : > { %v747_v6 = vpop.f32.mrf.mxu0  ;;  %v790_v7 = vpop.f32.mrf.mxu1 }
 0x145   : > { %v833_v8 = vadd.f32 %v747_v6, %v745_v3  ;;  %v851_v9 = vmul.f32 %v747_v6, %v747_v6  ;;  %v1180_v10 = vpack.c.bf16 %v747_v6, %v745_v3  ;;  %v1181_v11 = vpack.c.bf16 %v790_v7, %v788_v4 }
 0x146   : > { %v749_v13 = vpop.f32.mrf.mxu0  ;;  %v792_v14 = vpop.f32.mrf.mxu1  ;;  %v853_v25 = vmul.f32 %v790_v7, %v790_v7 }
 0x147   : > { %896 = vst [vmem:[%s1749_s24] sm:$0xff] %v1180_v10  ;;  %897 = vst [vmem:[%s1749_s24 + $0x8] sm:$0xff] %v1181_v11  ;;  %v834_v15 = vadd.f32 %v833_v8, %v788_v4  ;;  %v858_v16 = vadd.f32 %v851_v9, %v850_v5  ;;  %v854_v19 = vmul.f32 %v749_v13, %v749_v13 }
 0x148   : > { %v751_v17 = vpop.f32.mrf.mxu0  ;;  %v794_v18 = vpop.f32.mrf.mxu1  ;;  %v856_v27 = vmul.f32 %v792_v14, %v792_v14 }
 0x149   : > { %v838_v20 = vadd.f32 %v751_v17, %v749_v13  ;;  %v855_v21 = vmul.f32 %v751_v17, %v751_v17  ;;  %v1182_v22 = vpack.c.bf16 %v751_v17, %v749_v13  ;;  %v1183_v23 = vpack.c.bf16 %v794_v18, %v792_v14 }
 0x14a   : > { %v835_v24 = vadd.f32 %v834_v15, %v790_v7  ;;  %v859_v26 = vadd.f32 %v858_v16, %v852_v12  ;;  %v857_v31 = vmul.f32 %v794_v18, %v794_v18 }
 0x14b   : > { %v863_v28 = vadd.f32 %v855_v21, %v854_v19  ;;  %898 = vst [vmem:[%s1749_s24 + $0x10] sm:$0xff] %v1182_v22  ;;  %v839_v29 = vadd.f32 %v838_v20, %v792_v14  ;;  %899 = vst [vmem:[%s1749_s24 + $0x18] sm:$0xff] %v1183_v23 }
 0x14c   : > { %836 = vadd.xlane.f32.xlu0 %v835_v24  ;;  %v860_v30 = vadd.f32 %v859_v26, %v853_v25 }
 0x14d   : > { %v840_v32 = vadd.f32 %v839_v29, %v794_v18  ;;  %v864_v33 = vadd.f32 %v863_v28, %v856_v27 }
 0x14e   : > { %861 = vadd.xlane.f32.xlu1 %v860_v30 }
 0x14f   : > { %v865_v34 = vadd.f32 %v864_v33, %v857_v31 }
 0x150   : > { %841 = vadd.xlane.f32.xlu0 %v840_v32 }
 0x152   : > { %866 = vadd.xlane.f32.xlu1 %v865_v34 }
 0x153   : > { %1431 = shalt.err (!%p1428_p7)
}
 0x154   : > { %s1432_s18 = scalar_lea.hbm %s1773_s1, 512  ;;  %s1436_s10 = scalar_lea.hbm %s1835_s2, 1024 }
 0x155   : > { %p1433_p6 = scmp.ne.s32.totalorder %s1773_s1, %s1432_s18  ;;  %p1437_p11 = scmp.lt.s32.totalorder %s1773_s1, %s1835_s2 }
 0x156   : > { %p1438_p12 = scmp.lt.s32.totalorder %s1436_s10, %s1432_s18 }
 0x157   : > { %p1434_p4 = pnand %p1433_p6, %p1626_p13 }
 0x158   : > { %p1439_p1 = por %p1438_p12, %p1437_p11 }
 0x159   : > { %p1435_p9 = pneg %p1434_p4 }
 0x15b   : > { %p1440_p8 = pnand %p1439_p1, %p1435_p9 }
 0x15d   : > { %1443 = shalt.err (!%p1440_p8)
}
 0x15e   : > { %s1512_s22 = smov 256   ;;  %s1513_s30 = smov 16   ;;  %v831_v35 = vld [vmem:[%s1742_s8] sm:$0xff]  ;;  %v832_v40 = vld [vmem:[%s1742_s8 + $0x8] sm:$0xff] }
 0x15f   : > { %1191 = dma.vmem_to_hbm [thread:$0]  (%p1626_p13), %s1767_s29, 512, %s1773_s1, %s901_s6, %s1512_s22, %s1512_s22, %s1513_s30  }
 0x160   : > { %v848_v37 = vld [vmem:[%s1760_s11] sm:$0xff]  ;;  %v849_v43 = vld [vmem:[%s1760_s11 + $0x8] sm:$0xff] }
 0x1d5   : > { %v837_v36 = vpop.xlane.xlu0 %836 }
 0x1d6   : > { %v843_v38 = vadd.f32 %v837_v36, %v831_v35 }
 0x1d7   : > { %v862_v39 = vpop.xlane.xlu1 %861 }
 0x1d8   : > { %846 = vst.msk [vmem:[%s1742_s8] sm:$0xff] %vm815_vm0, %v843_v38  ;;  %v868_v41 = vadd.f32 %v862_v39, %v848_v37 }
 0x1d9   : > { %v842_v42 = vpop.xlane.xlu0 %841 }
 0x1da   : > { %870 = vst.msk [vmem:[%s1760_s11] sm:$0xff] %vm815_vm0, %v868_v41  ;;  %v844_v44 = vadd.f32 %v842_v42, %v832_v40 }
 0x1db   : > { %v867_v45 = vpop.xlane.xlu1 %866 }
 0x1dc   : > { %847 = vst.msk [vmem:[%s1742_s8 + $0x8] sm:$0xff] %vm815_vm0, %v844_v44  ;;  %v869_v46 = vadd.f32 %v867_v45, %v849_v43 }
 0x1de   : > { %871 = vst.msk [vmem:[%s1760_s11 + $0x8] sm:$0xff] %vm815_vm0, %v869_v46 }
 0x1df PF: > { %s947_s13 = sand.u32 1, %s1482_s15   ;;  %p1851_p13 = scmp.ne.s32.totalorder %s1843_s26, 0 }
 0x1e0   : > { %p1852_p10 = scmp.ge.s32.totalorder %s1502_s20, 2  ;;  %s948_s21 = scalar_lea.sflag [#allocation5], %s947_s13 }
 0x1e2   : > { %p1202_p0 = pnand %p1852_p10, %p1851_p13 }
 0x1e4   : > { %p1203_p2 = pneg %p1202_p0 }
 0x1e6   : > { %1477 = dma.done.wait (%p1203_p2), %s948_s21, 512  }
 0x1e7   : > { %1479 = vsyncadd (%p1203_p2), %s948_s21, 4294966784  ;;  %s22_s20 = sadd.s32 1, %s1502_s20   ;;  %s1853_s15 = smov %s1486_s16 }
 0x1e8   : > { %p19_p3 = scmp.ge.s32.totalorder %s22_s20, 4   ;;  %s1854_s16 = smov %s1490_s17 }
 0x1e9   : > { %s1855_s17 = smov %s1635_s28  ;;  %s1856_s18 = smov %s1498_s19 }
 0x1ea   : > { %s1857_s19 = smov %s1859_s5  ;;  %21 = sbr.rel (!%p19_p3) target bundleno = 9 (0x9), region = 114 }
 0x1ef   :  { %969 = vsyncpa [#allocation4], 1 }
 0x1f0   :  { %971 = vsyncpa [#allocation4 + $0x1], 1 }
 0x1f1   :  { %972 = vsyncpa [#allocation7], 1 }
 0x1f2   :  { %973 = vsyncpa [#allocation5], 1 }
 0x1f3   :  { %975 = vsyncpa [#allocation5 + $0x1], 1 }

</bundles_post_ra>
